<compile_context>
chip_gen: v5e
topology: v5e:2x2
jax: 0.10.0
libtpu: 0.0.40
codegen_flags: <defaults>
</compile_context>

<pallas_src>
import functools

import numpy as np

import jax
import jax.numpy as jnp
from jax import lax
from jax.experimental import pallas as pl
from jax.experimental.pallas import tpu as pltpu


# ---------------------------------------------------------------------------
# pltpu.roll convention probe (cached: one tiny eager pallas_call per process)
# ---------------------------------------------------------------------------
@functools.lru_cache(maxsize=None)
def _roll_like_jnp() -> bool:
    """True iff pltpu.roll(x, s, axis)[..., m] == x[..., (m - s) % M]."""
    def probe(x_ref, o_ref):
        o_ref[...] = pltpu.roll(x_ref[...], 1, axis=1)

    x = jnp.broadcast_to(jnp.arange(128, dtype=jnp.float32)[None, :], (8, 128))
    y = pl.pallas_call(
        probe,
        out_shape=jax.ShapeDtypeStruct((8, 128), jnp.float32),
        in_specs=[pl.BlockSpec(memory_space=pltpu.MemorySpace.VMEM)],
        out_specs=pl.BlockSpec(memory_space=pltpu.MemorySpace.VMEM),
    )(x)
    return bool(jax.device_get(y[0, 0]) == 127.0)


def _tap_shifts(W, M_img):
    """roll shift per 3x3 tap so rolled[m] == h[(m + dy*W + dx) mod M_img]."""
    like_jnp = _roll_like_jnp()
    shifts = []
    for dy in (-1, 0, 1):
        for dx in (-1, 0, 1):
            off = dy * W + dx
            shifts.append(((-off) % M_img) if like_jnp else (off % M_img))
    return tuple(shifts)


def _tap_masks(H, W):
    """(9, H*W) f32 zero-padding masks for the 3x3 taps (host-side constant)."""
    m = np.arange(H * W)
    row, col = m // W, m % W
    rows = []
    for dy in (-1, 0, 1):
        for dx in (-1, 0, 1):
            ok = ((row + dy >= 0) & (row + dy < H) &
                  (col + dx >= 0) & (col + dx < W))
            rows.append(ok.astype(np.float32))
    return jnp.asarray(np.stack(rows, axis=0))


# ---------------------------------------------------------------------------
# Fully fused Block4 kernel (one image / grid step)
# ---------------------------------------------------------------------------
def _block4_kernel(xin_ref, masks_ref,
                   wc1_ref, wc2_ref, wc3_ref, wc4_ref, wc5_ref, bc_ref,
                   we_ref, be_ref, wd_ref, bd_ref, wp_ref, bp_ref,
                   c2_ref, c3_ref, c4_ref, c5_ref,
                   inter_ref,
                   *, n_feats, tap_shifts):
    n = n_feats
    f32 = jnp.float32
    cdt = we_ref.dtype                        # MXU operand dtype (f32 or bf16)

    def cat(*pieces):
        # Sublane-axis concat; every piece is an exact multiple of 8 sublanes,
        # so this is pure layout placement feeding ONE wide MXU contraction.
        return jnp.concatenate([p.astype(cdt) for p in pieces], axis=0)

    def basic(wc_ref_, k, act):
        # concat folded into a single dot; f32 accumulation; bias + ReLU in f32.
        y = jnp.dot(wc_ref_[...], act.astype(cdt), preferred_element_type=f32)
        return jnp.maximum(y + bc_ref[:, k:k + 1], 0.0)

    def inv_res(i, c):
        # 1x1 expand + ReLU6 -> 3x3 depthwise + ReLU6 -> 1x1 project + residual.
        # The 6x-expanded hidden never leaves on-chip memory.
        h = jnp.dot(we_ref[i], c.astype(cdt), preferred_element_type=f32)
        h = jnp.clip(h + be_ref[:, i:i + 1], 0.0, 6.0)

        wd = wd_ref[i]                                   # (Chid, 9) f32
        d = h * wd[:, 4:5]                               # centre tap: no roll/mask
        for j in range(9):
            if j == 4:
                continue
            tap = pltpu.roll(h, tap_shifts[j], axis=1)   # XLU lane rotation
            # zero-pad mask (precomputed, shared by all 4 IR blocks) folded
            # straight into this tap's fma chain.
            d = d + (tap * masks_ref[j:j + 1, :]) * wd[:, j:j + 1]
        d = jnp.clip(d + bd_ref[:, i:i + 1], 0.0, 6.0)

        out = jnp.dot(wp_ref[i], d.astype(cdt), preferred_element_type=f32)
        return c + out + bp_ref[:, i:i + 1]

    # ---- c1 / b1 : cat1 = (x3[-1], x3[0], x2[0], x1[0]) --------------------
    c1 = basic(wc1_ref, 0, xin_ref[0 * n:4 * n, :])
    inter_ref[0] = c1
    inter_ref[1] = inv_res(0, c1)

    # ---- c2 / b2 : cat2 = (x3[1], x2[1], x1[1], b1, c1) --------------------
    c2 = basic(wc2_ref, 1, cat(xin_ref[4 * n:7 * n, :],
                               inter_ref[1], inter_ref[0]))
    c2_ref[...] = c2.astype(c2_ref.dtype)
    inter_ref[2] = inv_res(1, c2)

    # ---- c3 / b3 : cat3 = (x3[2], x2[2], x1[1], c1, b1, b2) ----------------
    c3 = basic(wc3_ref, 2, cat(xin_ref[7 * n:10 * n, :],
                               inter_ref[0], inter_ref[1], inter_ref[2]))
    c3_ref[...] = c3.astype(c3_ref.dtype)
    inter_ref[3] = inv_res(2, c3)

    # ---- c4 / b4 : cat4 = (x3[3], x2[3], x1[3], c1, b1, b2, b3) ------------
    c4 = basic(wc4_ref, 3, cat(xin_ref[10 * n:13 * n, :],
                               inter_ref[0], inter_ref[1], inter_ref[2],
                               inter_ref[3]))
    c4_ref[...] = c4.astype(c4_ref.dtype)
    inter_ref[4] = inv_res(3, c4)

    # ---- c5 : cat5 = (b1, b2, b3, b4, c1) -----------------------------------
    c5 = basic(wc5_ref, 4, cat(inter_ref[1], inter_ref[2], inter_ref[3],
                               inter_ref[4], inter_ref[0]))
    c5_ref[...] = c5.astype(c5_ref.dtype)


# ---------------------------------------------------------------------------
# Channel-major entry point (production path)
# ---------------------------------------------------------------------------
def block4_forward_cm(xin, masks, params, *, N, H, W, n_feats):
    HW = H * W
    n = n_feats
    assert HW % 128 == 0, "per-image H*W must be a multiple of 128 lanes"
    assert n % 8 == 0, "n_feats must be a multiple of 8 (sublane tile)"
    assert xin.shape == (13 * n, N * HW)

    kernel = functools.partial(_block4_kernel, n_feats=n,
                               tap_shifts=_tap_shifts(W, HW))

    def per_image(rows):
        return pl.BlockSpec((rows, HW), lambda i: (0, i))

    def const(a):
        zeros = (0,) * a.ndim
        return pl.BlockSpec(a.shape, lambda i, _z=zeros: _z)

    weights = (params["wc1"], params["wc2"], params["wc3"], params["wc4"],
               params["wc5"], params["bc"], params["we"], params["be"],
               params["wd"], params["bd"], params["wp"], params["bp"])

    out_sds = jax.ShapeDtypeStruct((n, N * HW), xin.dtype)
    outs = pl.pallas_call(
        kernel,
        out_shape=(out_sds,) * 4,
        grid_spec=pltpu.PrefetchScalarGridSpec(
            num_scalar_prefetch=0,
            grid=(N,),                                    # one image per step
            in_specs=[per_image(13 * n), const(masks)]
                     + [const(w) for w in weights],
            out_specs=tuple(per_image(n) for _ in range(4)),
            scratch_shapes=[pltpu.VMEM((5, n, HW), jnp.float32)],  # c1,b1..b4
        ),
        compiler_params=pltpu.CompilerParams(
            dimension_semantics=("parallel",)),            # v7x: both TCs
    )(xin, masks, *weights)
    return list(outs)


# ---------------------------------------------------------------------------
# NCHW wrapper (layout conversion only at the block boundary; see TODO above)
# ---------------------------------------------------------------------------
def _nchw_to_cm(x):
    N, C, H, W = x.shape
    return jnp.transpose(x, (1, 0, 2, 3)).reshape(C, N * H * W)


def _cm_to_nchw(x, N, H, W):
    C = x.shape[0]
    return jnp.transpose(x.reshape(C, N, H, W), (1, 0, 2, 3))


def pack_external_inputs(x1, x2, x3, dtype):
    # External concat sources in torch order, grouped per cat so every stage's
    # external slice is contiguous in sublanes (x3[3] / x1[1] duplicated:
    # ~32 KiB extra HBM beats per-stage gather logic).
    srcs = (x3[3], x3[0], x2[0], x1[0],      # cat1
            x3[1], x2[1], x1[1],             # cat2
            x3[2], x2[2], x1[1],             # cat3 (x1[1]: matches reference)
            x3[3], x2[3], x1[3])             # cat4
    return jnp.concatenate([_nchw_to_cm(s) for s in srcs], axis=0).astype(dtype)


def block4_forward_nchw(x1, x2, x3, params, *, compute_dtype=jnp.float32):
    N, n, H, W = x1[0].shape
    xin = pack_external_inputs(x1, x2, x3, compute_dtype)
    masks = _tap_masks(H, W)
    outs = block4_forward_cm(xin, masks, params, N=N, H=H, W=W, n_feats=n)
    return [_cm_to_nchw(o.astype(jnp.float32), N, H, W) for o in outs]


# ---------------------------------------------------------------------------
# Deterministic synthetic parameters (kernel-friendly packed layouts)
# ---------------------------------------------------------------------------
def init_block4_params(key, n_feats, exp=6, scale=0.05):
    n, hid = n_feats, n_feats * exp
    ks = iter(jax.random.split(key, 12))

    def rnd(shape):
        return jax.random.normal(next(ks), shape, jnp.float32) * scale

    return {
        # BasicBlock 1x1 weights, (n, K) in the torch concat order.
        "wc1": rnd((n, 4 * n)), "wc2": rnd((n, 5 * n)), "wc3": rnd((n, 6 * n)),
        "wc4": rnd((n, 7 * n)), "wc5": rnd((n, 5 * n)),
        "bc":  rnd((n, 5)),                     # column k = bias of c{k+1}
        # InvertedResidual weights, stacked over the four blocks b1..b4.
        "we": rnd((4, hid, n)),  "be": rnd((hid, 4)),
        "wd": rnd((4, hid, 9)),  "bd": rnd((hid, 4)),   # tap j=(dy+1)*3+(dx+1)
        "wp": rnd((4, n, hid)),  "bp": rnd((n, 4)),
    }


def cast_params(params, dtype):
    """Cast only the MXU-facing weights; biases / depthwise taps stay f32
    (VPU math stays f32 — matters on v5e which has no bf16 VALU)."""
    mxu = ("wc1", "wc2", "wc3", "wc4", "wc5", "we", "wp")
    return {k: (v.astype(dtype) if k in mxu else v) for k, v in params.items()}


# ---------------------------------------------------------------------------
# Pure-JAX reference (mirrors the PyTorch forward, NCHW) for validation
# ---------------------------------------------------------------------------
def _ref_basic(xs, w, b):
    x = jnp.concatenate(xs, axis=1)
    y = jnp.einsum("ok,nkhw->nohw", w, x, precision=lax.Precision.HIGHEST)
    return jnp.maximum(y + b[None, :, None, None], 0.0)


def _ref_ir(x, p, i):
    h = jnp.einsum("ok,nkhw->nohw", p["we"][i], x,
                   precision=lax.Precision.HIGHEST)
    h = jnp.clip(h + p["be"][:, i][None, :, None, None], 0.0, 6.0)
    h = lax.conv_general_dilated(
        h, p["wd"][i].reshape(-1, 1, 3, 3), (1, 1), "SAME",
        feature_group_count=h.shape[1],
        dimension_numbers=("NCHW", "OIHW", "NCHW"))
    h = jnp.clip(h + p["bd"][:, i][None, :, None, None], 0.0, 6.0)
    y = jnp.einsum("ok,nkhw->nohw", p["wp"][i], h,
                   precision=lax.Precision.HIGHEST)
    return x + y + p["bp"][:, i][None, :, None, None]


def block4_reference_nchw(x1, x2, x3, p):
    c1 = _ref_basic([x3[-1], x3[0], x2[0], x1[0]], p["wc1"], p["bc"][:, 0])
    b1 = _ref_ir(c1, p, 0)
    c2 = _ref_basic([x3[1], x2[1], x1[1], b1, c1], p["wc2"], p["bc"][:, 1])
    b2 = _ref_ir(c2, p, 1)
    c3 = _ref_basic([x3[2], x2[2], x1[1], c1, b1, b2], p["wc3"], p["bc"][:, 2])
    b3 = _ref_ir(c3, p, 2)
    c4 = _ref_basic([x3[3], x2[3], x1[3], c1, b1, b2, b3], p["wc4"],
                    p["bc"][:, 3])
    b4 = _ref_ir(c4, p, 3)
    c5 = _ref_basic([b1, b2, b3, b4, c1], p["wc5"], p["bc"][:, 4])
    return [c2, c3, c4, c5]


# ---------------------------------------------------------------------------
if __name__ == "__main__":
    N, n_feats, H, W = 2, 8, 16, 16      # NCHW inputs: (2, 8, 16, 16)
    exp = 6

    _roll_like_jnp()                     # populate the cached probe eagerly

    key = jax.random.PRNGKey(0)
    k_params, k_data = jax.random.split(key)
    params = init_block4_params(k_params, n_feats, exp)

    def make_list(k):
        return [jax.random.normal(ki, (N, n_feats, H, W), jnp.float32)
                for ki in jax.random.split(k, 4)]

    k1, k2, k3 = jax.random.split(k_data, 3)
    x1, x2, x3 = make_list(k1), make_list(k2), make_list(k3)

    refs = jax.jit(block4_reference_nchw)(x1, x2, x3, params)
    refs = [jax.block_until_ready(r) for r in refs]

    # --- f32 operands: tight(er) check.  Typical error ~1e-6; the gate is
    #     1e-2 only to stay robust to the MXU's f32 decomposition mode, while
    #     still 5x+ below any structural-bug signal. -------------------------
    fwd32 = jax.jit(functools.partial(block4_forward_nchw,
                                      compute_dtype=jnp.float32))
    outs32 = [jax.block_until_ready(o) for o in fwd32(x1, x2, x3, params)]
    assert all(o.shape == (N, n_feats, H, W) for o in outs32)
    assert all(bool(jnp.isfinite(o).all()) for o in outs32)
    err32 = max(float(jnp.max(jnp.abs(o - r))) for o, r in zip(outs32, refs))
    assert err32 < 1e-2, f"f32 mismatch vs pure-JAX reference: {err32}"

    # --- bf16 MXU operands (v6e/v7x fast path), f32 accumulation: loose check.
    params_bf16 = cast_params(params, jnp.bfloat16)
    fwd16 = jax.jit(functools.partial(block4_forward_nchw,
                                      compute_dtype=jnp.bfloat16))
    outs16 = [jax.block_until_ready(o)
              for o in fwd16(x1, x2, x3, params_bf16)]
    err16 = max(float(jnp.max(jnp.abs(o - r))) for o, r in zip(outs16, refs))
    assert err16 < 1e-1, f"bf16 mismatch vs pure-JAX reference: {err16}"

    print("KERNEL_OK")
</pallas_src>

<mosaic_0001>
module attributes {stable_mosaic.version = 11 : i64} {
  func.func @probe(%arg0: memref<8x128xf32, #tpu.memory_space<vmem>>, %arg1: memref<8x128xf32, #tpu.memory_space<vmem>>) attributes {dimension_semantics = [], scalar_prefetch = 0 : i64, scratch_operands = 0 : i64, tpu.core_type = #tpu.core_type<tc>} {
    %c0 = arith.constant 0 : index
    %c0_0 = arith.constant 0 : index
    %0 = vector.load %arg0[%c0, %c0_0] : memref<8x128xf32, #tpu.memory_space<vmem>>, vector<8x128xf32>
    %c1_i32 = arith.constant 1 : i32
    %1 = tpu.dynamic_rotate %0 by %c1_i32 dim 1 : vector<8x128xf32>, i32 -> vector<8x128xf32>
    %c0_1 = arith.constant 0 : index
    %c0_2 = arith.constant 0 : index
    %2 = vector.load %arg1[%c0_1, %c0_2] : memref<8x128xf32, #tpu.memory_space<vmem>>, vector<8x128xf32>
    tpu.vector_store %arg1[%c0_1, %c0_2], %1 {strides = array<i32>} : memref<8x128xf32, #tpu.memory_space<vmem>>, vector<8x128xf32>,
    return
  }
}

</mosaic_0001>

<bundles_post_ra>
// kernel: tpu_custom_call.1
= control target key start
LH: loop header
LB: loop body
LE: loop exit
PB: predicated region body
PF: predicated region fallthrough
CT: control target
= control target key end

     0   :  { %6 = vsyncpa [#allocation3], 0  ;;  %s118_s0 = inlined_call_operand.hbm [shape: f32[8,128], index: 0, kind: input, shape index: {}]   ;;  %s119_s1 = inlined_call_operand.hbm [shape: f32[8,128], index: 1, kind: output, shape index: {}]  }
   0x1   :  { %7 = vsyncpa [#allocation4], 0  ;;  %s13_s8 = sshll.u32 %s118_s0, 4  ;;  %s99_s9 = smov [#allocation2]   ;;  %s14_s8 = int_to_ptr.hbm [resolvable:$true] %s13_s8 }
   0x2   :  { %s15_s10 = sshll.u32 %s99_s9, 4  ;;  %s16_s10 = int_to_ptr.vmem [resolvable:$true] %s15_s10 }
   0x3   :  { %18 = dma.hbm_to_vmem [thread:$0]  %s14_s8, 128, %s16_s10, [#allocation3]  }
   0x4   :  { %95 = dma.done.wait [#allocation3], 128  }
   0x5   :  { %96 = vsyncadd [#allocation3], 4294967168  ;;  %v23_v0 = vld [vmem:[#allocation2] sm:$0xff]  ;;  %s100_s11 = smov 1   ;;  %s101_s12 = smov [#allocation5]  }
   0x6   :  { %24 = vrot.lane.b32.xlu0 %v23_v0, %s100_s11  ;;  %s32_s13 = sshll.u32 %s101_s12, 4  ;;  %s34_s16 = sshll.u32 %s119_s1, 4  ;;  %s33_s13 = int_to_ptr.vmem [resolvable:$true] %s32_s13  ;;  %s35_s16 = int_to_ptr.hbm [resolvable:$true] %s34_s16 }
  0x78   :  { %v25_v1 = vpop.permute.xlu0 %24 }
  0x79   :  { %26 = vst [vmem:[#allocation5] sm:$0xff] %v25_v1 }
  0x7a   :  { %37 = dma.vmem_to_hbm [thread:$0]  %s33_s13, 128, %s35_s16, [#allocation4]  }
  0x7b   :  { %97 = dma.done.wait [#allocation4], 128  }
  0x7c   :  { %98 = vsyncadd [#allocation4], 4294967168 }
  0x7d   :  { %42 = vsyncpa [#allocation3], 1 }
  0x7e   :  { %43 = vsyncpa [#allocation4], 1 }

</bundles_post_ra>
